<compile_context>
chip_gen: v7x
topology: tpu7x:2x2x1
jax: 0.10.0
libtpu: 0.0.40
codegen_flags: <defaults>
</compile_context>

<pallas_src>
import jax
import jax.numpy as jnp
from jax.experimental import pallas as pl
from jax.experimental.pallas import tpu as pltpu

_LANE = 128      # vreg lane width
_SUBLANE = 8     # vreg sublane count (f32)


def _round_up(x, m):
    return ((x + m - 1) // m) * m


def _mlp_kernel(x_ref, w1_ref, b1_ref, w2_ref, b2_ref, out_ref):
    # fc1 on MXU (bf16 inputs, f32 accumulate). x arrives as f32 from HBM and
    # is cast in-register (saves a wrapper-side pad+cast pass over HBM).
    x = x_ref[...].astype(w1_ref.dtype)                               # (BM, IN) bf16
    h = jnp.dot(x, w1_ref[...], preferred_element_type=jnp.float32)   # (BM, HID_P) f32
    h = jnp.maximum(h + b1_ref[...], 0.0)                             # bias + ReLU, f32 VPU
    # fc2 on MXU; cast to bf16 only at the matmul input.
    q = jnp.dot(h.astype(w2_ref.dtype), w2_ref[...],
                preferred_element_type=jnp.float32)                   # (BM, A_P) f32
    q = q + b2_ref[...]
    # Store only the real action lanes (out last dim == A, masked stores).
    a = out_ref.shape[-1]
    out_ref[...] = q[:, :a].astype(out_ref.dtype)


def prepare_params(w1, b1, w2, b2, compute_dtype=jnp.bfloat16):
    """One-time weight prep: pad to lane-dense layouts and cast to bf16.

    w1: (in, 40); b1: (40,); w2: (40, A); b2: (A,).  Weights are stored
    (in_features, out_features), i.e. transposed relative to PyTorch's
    (out, in), so the kernel computes plain x @ W + b.
    """
    in_size, hidden = w1.shape
    nb_action = w2.shape[1]
    hid_p = _round_up(hidden, _LANE)   # 40 -> 128 (one MXU pass; zero cols inert)
    a_p = _round_up(nb_action, _LANE)  # padded only inside VMEM, never written to HBM

    w1_p = jnp.pad(w1, ((0, 0), (0, hid_p - hidden))).astype(compute_dtype)
    b1_p = jnp.pad(b1, (0, hid_p - hidden)).astype(jnp.float32).reshape(1, hid_p)
    w2_p = jnp.pad(w2, ((0, hid_p - hidden), (0, a_p - nb_action))).astype(compute_dtype)
    b2_p = jnp.pad(b2, (0, a_p - nb_action)).astype(jnp.float32).reshape(1, a_p)
    return (w1_p, b1_p, w2_p, b2_p, nb_action)


def network_forward(state, params, *, block_m=512):
    """state: (B, input_size) f32; params: output of prepare_params().

    Returns (B, nb_action) Q-values in state.dtype.
    """
    w1_p, b1_p, w2_p, b2_p, nb_action = params
    B, in_size = state.shape
    hid_p = w1_p.shape[1]
    a_p = w2_p.shape[1]

    # Sublane-aligned batch tiling. If the whole (big-enough) batch fits in
    # one tile, split into two so the "parallel" grid axis can shard across
    # the 2 TensorCores on v7x.
    b_al = _round_up(B, _SUBLANE)
    bm = min(_round_up(block_m, _SUBLANE), b_al)
    if B > 2 * _SUBLANE and b_al <= bm:
        bm = _round_up((b_al + 1) // 2, _SUBLANE)
    b_p = _round_up(B, bm)
    grid_m = b_p // bm

    # Pad the batch only when actually needed; state stays f32 (cast in-kernel).
    x_p = state if b_p == B else jnp.pad(state, ((0, b_p - B), (0, 0)))

    out = pl.pallas_call(
        _mlp_kernel,
        out_shape=jax.ShapeDtypeStruct((b_p, nb_action), state.dtype),
        grid_spec=pl.GridSpec(
            grid=(grid_m,),
            in_specs=[
                pl.BlockSpec((bm, in_size), lambda i: (i, 0)),    # x tile marches over B
                pl.BlockSpec((in_size, hid_p), lambda i: (0, 0)),  # weights resident
                pl.BlockSpec((1, hid_p), lambda i: (0, 0)),
                pl.BlockSpec((hid_p, a_p), lambda i: (0, 0)),
                pl.BlockSpec((1, a_p), lambda i: (0, 0)),
            ],
            # Narrow output: last block dim == full array dim (A), legal and
            # avoids writing 125 zero lanes per row back to HBM.
            out_specs=pl.BlockSpec((bm, nb_action), lambda i: (i, 0)),
        ),
        compiler_params=pltpu.CompilerParams(
            dimension_semantics=("parallel",)),   # shard batch steps across TCs (v7x)
    )(x_p, w1_p, b1_p, w2_p, b2_p)

    return out if b_p == B else out[:B]


def init_params(key, input_size, nb_action, hidden=40):
    """Deterministic init mimicking PyTorch Linear's U(-1/sqrt(fan_in), ...)."""
    k1, k2, k3, k4 = jax.random.split(key, 4)
    bound1 = 1.0 / jnp.sqrt(jnp.float32(input_size))
    bound2 = 1.0 / jnp.sqrt(jnp.float32(hidden))
    w1 = jax.random.uniform(k1, (input_size, hidden), jnp.float32, -bound1, bound1)
    b1 = jax.random.uniform(k2, (hidden,), jnp.float32, -bound1, bound1)
    w2 = jax.random.uniform(k3, (hidden, nb_action), jnp.float32, -bound2, bound2)
    b2 = jax.random.uniform(k4, (nb_action,), jnp.float32, -bound2, bound2)
    return w1, b1, w2, b2


def _reference(state, w1, b1, w2, b2):
    return jnp.maximum(state @ w1 + b1, 0.0) @ w2 + b2


if __name__ == "__main__":
    input_size, nb_action = 5, 3

    key = jax.random.PRNGKey(0)
    pkey, xkey1, xkey2 = jax.random.split(key, 3)
    w1, b1, w2, b2 = init_params(pkey, input_size, nb_action)
    params = prepare_params(w1, b1, w2, b2)   # one-time pad + bf16 cast

    ok = True
    # bf16 MXU matmuls with f32 accumulation -> loosened tolerances.
    tol = dict(atol=2e-2, rtol=5e-2)

    # Case 1: tiny batch (B=4) -> padded to one 8-row tile, single grid step.
    state_small = jax.random.normal(xkey1, (4, input_size), jnp.float32)
    q_small = jax.block_until_ready(network_forward(state_small, params))
    ref_small = _reference(state_small, w1, b1, w2, b2)
    ok &= q_small.shape == (4, nb_action)
    ok &= bool(jnp.allclose(q_small, ref_small, **tol))

    # Case 2: minibatch (B=64) with default tile -> auto-split into 2 grid
    # steps so the parallel batch axis covers both TCs on v7x.
    state_mid = jax.random.normal(xkey2, (64, input_size), jnp.float32)
    q_mid = jax.block_until_ready(network_forward(state_mid, params))
    ref_mid = _reference(state_mid, w1, b1, w2, b2)
    ok &= q_mid.shape == (64, nb_action)
    ok &= bool(jnp.allclose(q_mid, ref_mid, **tol))

    # Case 3: same minibatch with a small block -> multi-step grid path.
    q_mid2 = jax.block_until_ready(network_forward(state_mid, params, block_m=16))
    ok &= q_mid2.shape == (64, nb_action)
    ok &= bool(jnp.allclose(q_mid2, ref_mid, **tol))

    assert ok
    print("KERNEL_OK")
</pallas_src>

<mosaic_0001>
module attributes {stable_mosaic.version = 11 : i64} {
  func.func @_mlp_kernel(%arg0: i32, %arg1: memref<8x5xf32, #tpu.memory_space<vmem>>, %arg2: memref<5x128xbf16, #tpu.memory_space<vmem>>, %arg3: memref<1x128xf32, #tpu.memory_space<vmem>>, %arg4: memref<128x128xbf16, #tpu.memory_space<vmem>>, %arg5: memref<1x128xf32, #tpu.memory_space<vmem>>, %arg6: memref<8x3xf32, #tpu.memory_space<vmem>>) attributes {dimension_semantics = [#tpu.dimension_semantics<parallel>], iteration_bounds = array<i64: 1>, scalar_prefetch = 0 : i64, scratch_operands = 0 : i64, tpu.core_type = #tpu.core_type<tc>, window_params = [{transform_indices = @transform_0, window_bounds = array<i64: 8, 5>}, {pipeline_mode = #tpu.pipeline_mode<synchronous>, transform_indices = @transform_1, window_bounds = array<i64: 5, 128>}, {pipeline_mode = #tpu.pipeline_mode<synchronous>, transform_indices = @transform_2, window_bounds = array<i64: 1, 128>}, {pipeline_mode = #tpu.pipeline_mode<synchronous>, transform_indices = @transform_3, window_bounds = array<i64: 128, 128>}, {pipeline_mode = #tpu.pipeline_mode<synchronous>, transform_indices = @transform_4, window_bounds = array<i64: 1, 128>}, {transform_indices = @transform_5, window_bounds = array<i64: 8, 3>}]} {
    %c0 = arith.constant 0 : index
    %c0_0 = arith.constant 0 : index
    %0 = vector.load %arg1[%c0, %c0_0] : memref<8x5xf32, #tpu.memory_space<vmem>>, vector<8x5xf32>
    %1 = arith.truncf %0 : vector<8x5xf32> to vector<8x5xbf16>
    %c0_1 = arith.constant 0 : index
    %c0_2 = arith.constant 0 : index
    %2 = vector.load %arg2[%c0_1, %c0_2] : memref<5x128xbf16, #tpu.memory_space<vmem>>, vector<5x128xbf16>
    %cst = arith.constant dense<0.000000e+00> : vector<8x128xf32>
    %3 = tpu.matmul %1, %2, %cst {dimension_numbers = #tpu.dot_dimension_numbers<[1], [0], [0], [1], [0, 0, 1, 1], [], []>} : vector<8x5xbf16>, vector<5x128xbf16>, vector<8x128xf32> -> vector<8x128xf32>
    %c0_3 = arith.constant 0 : index
    %c0_4 = arith.constant 0 : index
    %4 = vector.load %arg3[%c0_3, %c0_4] : memref<1x128xf32, #tpu.memory_space<vmem>>, vector<1x128xf32>
    %5 = vector.broadcast %4 : vector<1x128xf32> to vector<8x128xf32>
    %6 = arith.addf %3, %5 : vector<8x128xf32>
    %cst_5 = arith.constant 0.000000e+00 : f32
    %7 = vector.broadcast %cst_5 : f32 to vector<8x128xf32>
    %8 = arith.maximumf %6, %7 : vector<8x128xf32>
    %9 = arith.truncf %8 : vector<8x128xf32> to vector<8x128xbf16>
    %c0_6 = arith.constant 0 : index
    %c0_7 = arith.constant 0 : index
    %10 = vector.load %arg4[%c0_6, %c0_7] : memref<128x128xbf16, #tpu.memory_space<vmem>>, vector<128x128xbf16>
    %cst_8 = arith.constant dense<0.000000e+00> : vector<8x128xf32>
    %11 = tpu.matmul %9, %10, %cst_8 {dimension_numbers = #tpu.dot_dimension_numbers<[1], [0], [0], [1], [0, 0, 1, 1], [], []>} : vector<8x128xbf16>, vector<128x128xbf16>, vector<8x128xf32> -> vector<8x128xf32>
    %c0_9 = arith.constant 0 : index
    %c0_10 = arith.constant 0 : index
    %12 = vector.load %arg5[%c0_9, %c0_10] : memref<1x128xf32, #tpu.memory_space<vmem>>, vector<1x128xf32>
    %13 = vector.broadcast %12 : vector<1x128xf32> to vector<8x128xf32>
    %14 = arith.addf %11, %13 : vector<8x128xf32>
    %15 = vector.extract_strided_slice %14 {offsets = [0, 0], sizes = [8, 3], strides = [1, 1]} : vector<8x128xf32> to vector<8x3xf32>
    %c0_11 = arith.constant 0 : index
    %c0_12 = arith.constant 0 : index
    %16 = vector.load %arg6[%c0_11, %c0_12] : memref<8x3xf32, #tpu.memory_space<vmem>>, vector<8x3xf32>
    tpu.vector_store %arg6[%c0_11, %c0_12], %15 {strides = array<i32>} : memref<8x3xf32, #tpu.memory_space<vmem>>, vector<8x3xf32>,
    return
  }
  func.func @transform_0(%arg0: i32) -> (i32, i32) {
    %c0_i32 = arith.constant 0 : i32
    %c0_i32_0 = arith.constant 0 : i32
    return %arg0, %c0_i32 : i32, i32
  }
  func.func @transform_1(%arg0: i32) -> (i32, i32) {
    %c0_i32 = arith.constant 0 : i32
    %c0_i32_0 = arith.constant 0 : i32
    %c0_i32_1 = arith.constant 0 : i32
    return %c0_i32, %c0_i32_0 : i32, i32
  }
  func.func @transform_2(%arg0: i32) -> (i32, i32) {
    %c0_i32 = arith.constant 0 : i32
    %c0_i32_0 = arith.constant 0 : i32
    %c0_i32_1 = arith.constant 0 : i32
    return %c0_i32, %c0_i32_0 : i32, i32
  }
  func.func @transform_3(%arg0: i32) -> (i32, i32) {
    %c0_i32 = arith.constant 0 : i32
    %c0_i32_0 = arith.constant 0 : i32
    %c0_i32_1 = arith.constant 0 : i32
    return %c0_i32, %c0_i32_0 : i32, i32
  }
  func.func @transform_4(%arg0: i32) -> (i32, i32) {
    %c0_i32 = arith.constant 0 : i32
    %c0_i32_0 = arith.constant 0 : i32
    %c0_i32_1 = arith.constant 0 : i32
    return %c0_i32, %c0_i32_0 : i32, i32
  }
  func.func @transform_5(%arg0: i32) -> (i32, i32) {
    %c0_i32 = arith.constant 0 : i32
    %c0_i32_0 = arith.constant 0 : i32
    return %arg0, %c0_i32 : i32, i32
  }
}

</mosaic_0001>

<bundles_post_ra>
// kernel: tpu_custom_call.1
= control target key start
LH: loop header
LB: loop body
LE: loop exit
PB: predicated region body
PF: predicated region fallthrough
CT: control target
= control target key end

     0   :  { %10 = vsyncpa [#allocation3], 0  ;;  %s457_s0 = inlined_call_operand.hbm [shape: f32[8,5], index: 0, kind: input, shape index: {}]   ;;  %s458_s1 = inlined_call_operand.hbm [shape: bf16[5,128], index: 1, kind: input, shape index: {}]   ;;  %s459_s2 = inlined_call_operand.vmem [shape: f32[1,128], index: 2, kind: input, shape index: {}]   ;;  %s460_s3 = inlined_call_operand.hbm [shape: bf16[128,128], index: 3, kind: input, shape index: {}]   ;;  %s461_s4 = inlined_call_operand.vmem [shape: f32[1,128], index: 4, kind: input, shape index: {}]   ;;  %s462_s5 = inlined_call_operand.vmem [shape: f32[8,3], index: 5, kind: output, shape index: {}]  }
   0x1   :  { %11 = vsyncpa [#allocation5], 0  ;;  %s374_s18 = smov [#allocation4]   ;;  %s375_s20 = smov [#allocation2]  }
   0x2   :  { %s28_s19 = sshll.u32 %s374_s18, 4  ;;  %s18_s21 = sshll.u32 %s375_s20, 4  ;;  %s29_s19 = int_to_ptr.vmem [resolvable:$true] %s28_s19  ;;  %s19_s21 = int_to_ptr.vmem [resolvable:$true] %s18_s21 }
   0x3   :  { %s304_s24 = scalar_lea.hbm %s458_s1, 64 }
   0x4   :  { %p305_p0 = scmp.ne.s32.totalorder %s458_s1, %s304_s24  ;;  %p308_p1 = scmp.lt.u32.totalorder %s304_s24, %s458_s1 }
   0x6   :  { %p310_p2 = pnand %p308_p1, %p305_p0 }
   0x8   :  { %313 = shalt.err (!%p310_p2)
}
   0x9   :  { %s314_s29 = scalar_lea.vmem %s29_s19, 64  ;;  %p319_p4 = scmp.lt.s32.totalorder %s29_s19, %s29_s19 }
   0xa   :  { %p315_p3 = scmp.ne.s32.totalorder %s29_s19, %s314_s29  ;;  %p320_p5 = scmp.lt.s32.totalorder %s314_s29, %s314_s29 }
   0xc   :  { %p321_p6 = por %p320_p5, %p319_p4 }
   0xe   :  { %p322_p7 = pnand %p321_p6, %p315_p3 }
  0x10   :  { %325 = shalt.err (!%p322_p7)
}
  0x11   :  { %31 = dma.hbm_to_vmem [thread:$0]  %s458_s1, 64, %s29_s19, [#allocation5]  }
  0x12   :  { %s326_s9 = scalar_lea.hbm %s457_s0, 128 }
  0x13   :  { %p327_p8 = scmp.ne.s32.totalorder %s457_s0, %s326_s9  ;;  %p330_p9 = scmp.lt.u32.totalorder %s326_s9, %s457_s0 }
  0x15   :  { %p332_p10 = pnand %p330_p9, %p327_p8 }
  0x17   :  { %335 = shalt.err (!%p332_p10)
}
  0x18   :  { %s336_s14 = scalar_lea.vmem %s19_s21, 128  ;;  %p341_p12 = scmp.lt.s32.totalorder %s19_s21, %s19_s21 }
  0x19   :  { %p337_p11 = scmp.ne.s32.totalorder %s19_s21, %s336_s14  ;;  %p342_p13 = scmp.lt.s32.totalorder %s336_s14, %s336_s14 }
  0x1b   :  { %p343_p0 = por %p342_p13, %p341_p12 }
  0x1d   :  { %p344_p1 = pnand %p343_p0, %p337_p11 }
  0x1f   :  { %347 = shalt.err (!%p344_p1)
}
  0x20   :  { %21 = dma.hbm_to_vmem [thread:$0]  %s457_s0, 128, %s19_s21, [#allocation3]  }
  0x21   :  { %s376_s16 = smov [#allocation6]   ;;  %s348_s20 = scalar_lea.hbm %s460_s3, 1024 }
  0x22   :  { %s39_s17 = sshll.u32 %s376_s16, 4  ;;  %p349_p2 = scmp.ne.s32.totalorder %s460_s3, %s348_s20  ;;  %s40_s17 = int_to_ptr.vmem [resolvable:$true] %s39_s17 }
  0x23   :  { %p352_p3 = scmp.lt.u32.totalorder %s348_s20, %s460_s3 }
  0x25   :  { %p354_p4 = pnand %p352_p3, %p349_p2 }
  0x27   :  { %357 = shalt.err (!%p354_p4)
}
  0x28   :  { %s358_s26 = scalar_lea.vmem %s40_s17, 1024  ;;  %p363_p6 = scmp.lt.s32.totalorder %s40_s17, %s40_s17 }
  0x29   :  { %p359_p5 = scmp.ne.s32.totalorder %s40_s17, %s358_s26  ;;  %p364_p7 = scmp.lt.s32.totalorder %s358_s26, %s358_s26 }
  0x2b   :  { %p365_p8 = por %p364_p7, %p363_p6 }
  0x2d   :  { %p366_p9 = pnand %p365_p8, %p359_p5 }
  0x2f   :  { %369 = shalt.err (!%p366_p9)
}
  0x30   :  { %s377_s0 = smov 64   ;;  %s378_s21 = smov 4  }
  0x31   :  { %45 = dma.hbm_to_vmem [thread:$0]  %s460_s3, 1024, %s40_s17, [#allocation5], %s377_s0, %s377_s0, %s378_s21  }
  0x32   :  { %370 = dma.done.wait [#allocation3], 128  }
  0x33   :  { %371 = vsyncadd [#allocation3], 4294967168 }
  0x34   :  { %372 = dma.done.wait [#allocation5], 1088  }
  0x35   :  { %373 = vsyncadd [#allocation5], 4294966208  ;;  %vm72_vm0 = vcmask 1041408   ;;  %v379_v0 = vmov 0.0   ;;  %vm73_vm1 = vcmask 1042432   ;;  %v380_v1 = vmov 65535  }
  0x36   :  { %262 = vmatprep.subr.bf16.mxu0 %v379_v0  ;;  %268 = vmatprep.subr.bf16.mxu1 %v379_v0  ;;  %v74_v2 = vsel %vm72_vm0, 4294967295, %v380_v1  ;;  %vm381_vm2 = vmmov 0   ;;  %v60_v4 = vld [vmem:[#allocation4] sm:$0x7]  ;;  %v58_v5 = vld [vmem:[#allocation2] sm:$0xff]  ;;  %v296_v7 = vld [vmem:[#allocation6] sm:$0xff]  }
  0x37   :  { %264 = vmatprep.mubr.msk.bf16.mxu0 %vm381_vm2, %v379_v0  ;;  %284 = vmatprep.mubr.msk.bf16.mxu1 %vm381_vm2, %v379_v0  ;;  %v75_v3 = vsel %vm73_vm1, %v74_v2, 0  ;;  %v59_v8 = vpack.c.bf16 %v58_v5, %v58_v5  ;;  %vm68_vm3 = vcmask 39936   ;;  %v297_v9 = vld [vmem:[#allocation6 + $0x8] sm:$0xff]   ;;  %v298_v10 = vld [vmem:[#allocation6 + $0x10] sm:$0xff]   ;;  %v299_v11 = vld [vmem:[#allocation6 + $0x18] sm:$0xff]   ;;  %vm232_vm4 = vcmask 23552  }
  0x38   :  { %v77_v6 = vand.u32 %v75_v3, %v60_v4  ;;  %269 = vmatpush3.bf16.msra.mxu1 %v296_v7  ;;  %v300_v12 = vld [vmem:[#allocation6 + $0x20] sm:$0xff]   ;;  %v301_v13 = vld [vmem:[#allocation6 + $0x28] sm:$0xff]   ;;  %v302_v14 = vld [vmem:[#allocation6 + $0x30] sm:$0xff]  }
  0x39   :  { %270 = vmatprep.subr.bf16.mxu1 %v379_v0  ;;  %v303_v15 = vld [vmem:[#allocation6 + $0x38] sm:$0xff]   ;;  %v240_v16 = vld [vmem:[%s459_s2] ss:$0 sm:$0xff] }
  0x3a   :  { %263 = vmatpush3.bf16.msra.mxu0 %v77_v6  ;;  %v242_v24 = vld [vmem:[%s461_s4] ss:$0 sm:$0xff] }
  0x3c   :  { %271 = vmatpush3.bf16.msra.mxu1 %v297_v9 }
  0x3d   :  { %265 = vmatmul.mubr.msk.bf16.vlgmr.msra.gmra.mrb[0].mxu0 %vm68_vm3, %v59_v8  ;;  %272 = vmatprep.subr.bf16.mxu1 %v379_v0 }
  0x40   :  { %273 = vmatpush3.bf16.msra.mxu1 %v298_v10 }
  0x41   :  { %274 = vmatprep.subr.bf16.mxu1 %v379_v0 }
  0x44   :  { %275 = vmatpush3.bf16.msra.mxu1 %v299_v11 }
  0x45   :  { %276 = vmatprep.subr.bf16.mxu1 %v379_v0 }
  0x48   :  { %277 = vmatpush3.bf16.msra.mxu1 %v300_v12 }
  0x49   :  { %278 = vmatprep.subr.bf16.mxu1 %v379_v0 }
  0x4c   :  { %279 = vmatpush3.bf16.msra.mxu1 %v301_v13 }
  0x4d   :  { %280 = vmatprep.subr.bf16.mxu1 %v379_v0 }
  0x50   :  { %281 = vmatpush3.bf16.msra.mxu1 %v302_v14 }
  0x51   :  { %282 = vmatprep.subr.bf16.mxu1 %v379_v0 }
  0x54   :  { %283 = vmatpush3.bf16.msra.mxu1 %v303_v15 }
 0x110   :  { %v113_v17 = vpop.f32.mrb[0].mxu0 }
 0x111   :  { %v114_v18 = vadd.f32 %v240_v16, %v113_v17  ;;  %v266_v19 = vpop.f32.mrb[1].mxu0 }
 0x112   :  { %v116_v20 = vpop.f32.mrb[2].mxu0 }
 0x113   :  { %v119_v21 = vmax.f32 %v114_v18, 0.0  ;;  %v267_v22 = vpop.f32.mrb[3].mxu0 }
 0x115   :  { %v120_v23 = vpack.c.bf16 %v119_v21, %v119_v21 }
 0x117   :  { %285 = vmatmul.mubr.bf16.vlgmr.msra.gmra.mrb[0].mxu1 %v120_v23 }
 0x1ea   :  { %v226_v25 = vpop.f32.mrb[0].mxu1 }
 0x1eb   :  { %v227_v26 = vadd.f32 %v242_v24, %v226_v25  ;;  %v286_v27 = vpop.f32.mrb[1].mxu1 }
 0x1ec   :  { %v229_v28 = vpop.f32.mrb[2].mxu1 }
 0x1ed   :  { %233 = vst.msk [vmem:[%s462_s5] sm:$0xff] %vm232_vm4, %v227_v26  ;;  %v287_v29 = vpop.f32.mrb[3].mxu1 }
 0x1ee   :  { %238 = vsyncpa [#allocation3], 1 }
 0x1ef   :  { %239 = vsyncpa [#allocation5], 1 }

</bundles_post_ra>
